<compile_context>
chip_gen: v6e
topology: v6e:2x2x1
jax: 0.10.0
libtpu: 0.0.40
codegen_flags: <defaults>
</compile_context>

<pallas_src>
import jax
import jax.numpy as jnp
from jax import lax
from jax.experimental import pallas as pl
from jax.experimental.pallas import tpu as pltpu


def classifier_kernel(x_ref, w1t_ref, b1_ref, w2t_ref, b2_ref, w3_ref, b3_ref,
                      o_ref):
    # x tile arrives as (tb, F) f32.  Cast to the MXU operand dtype in-kernel
    # (the VPU has slack; avoids a separate wrapper-side HBM pass over x).
    xt = x_ref[...].astype(w1t_ref.dtype)                       # (tb, F)

    # fc1 + tanh.  Contract F with F so the result is (H, tb): batch lands on
    # the lane dimension (lane-dense MXU output, 4x fewer EUP pushes).
    # Dropout d1 = identity (inference semantics).
    h1 = jnp.tanh(
        lax.dot_general(w1t_ref[...], xt,
                        dimension_numbers=(((1,), (1,)), ((), ())),
                        preferred_element_type=jnp.float32)
        + b1_ref[...])                                           # (H, tb) f32

    # fc2 + tanh.  Dropout d2 = identity.
    h2 = jnp.tanh(
        jnp.dot(w2t_ref[...], h1.astype(w2t_ref.dtype),
                preferred_element_type=jnp.float32)
        + b2_ref[...])                                           # (H, tb) f32

    # fc3 (output width 1): skip the MXU -- VPU multiply with the (H, 1)
    # weight column + sublane (XLU) reduce gives a lane-dense (1, tb) row.
    o_ref[...] = (jnp.sum(h2 * w3_ref[...], axis=0, keepdims=True)
                  + b3_ref[...])


def _round_up(n, m):
    return ((n + m - 1) // m) * m


def _choose_batch_tile(B, block_b):
    # Small batch: one grid step; blocks equal the full arrays so no (8,128)
    # divisibility constraints apply.
    if B <= block_b and B <= 1024:
        return B
    # Tiled case: the output block is (1, tb) so tb must be a multiple of 128.
    # Above ~1024 rows force >=2 grid steps so ("parallel",) can split the
    # batch across v7x's 2 TensorCores (harmless on single-TC v5e/v6e).
    tb = min(_round_up(block_b, 128), _round_up(pl.cdiv(B, 2), 128))
    return max(tb, 128)


def classifier_forward(x, params, *, block_b=4096, use_bf16=True):
    """x: [B, num_inputs] f32 -> [B, 1] f32 (eval-mode forward).

    params: w1t (H,F), b1 (H,1), w2t (H,H), b2 (H,1), w3 (H,1), b3 (1,1)
    (weights in nn.Linear (out, in) layout).
    """
    B, F = x.shape
    w1t, b1 = params["w1t"], params["b1"]
    w2t, b2 = params["w2t"], params["b2"]
    w3, b3 = params["w3"], params["b3"]
    H = w1t.shape[0]

    if use_bf16:
        # One-time weight casts in the wrapper; the per-tile x cast happens
        # in-kernel so x is read from HBM exactly once, as f32.
        w1t = w1t.astype(jnp.bfloat16)
        w2t = w2t.astype(jnp.bfloat16)

    tb = _choose_batch_tile(B, block_b)
    grid = (pl.cdiv(B, tb),)
    # If B % tb != 0 the last step runs padded batch columns through the
    # matmuls/tanh; columns are independent and the output store is cropped,
    # so valid rows are unaffected.

    const = lambda i: (0, 0)  # weights/biases: same block every step -> resident

    cost = pl.CostEstimate(
        flops=2 * B * (F * H + H * H + H),
        transcendentals=2 * B * H,
        bytes_accessed=int(x.size * x.dtype.itemsize
                           + (w1t.size + w2t.size) * w1t.dtype.itemsize
                           + 4 * (b1.size + b2.size + w3.size + b3.size)
                           + 4 * B),
    )

    out = pl.pallas_call(
        classifier_kernel,
        out_shape=jax.ShapeDtypeStruct((1, B), jnp.float32),
        grid=grid,
        in_specs=[
            pl.BlockSpec((tb, F), lambda i: (i, 0)),   # x: batch-tiled
            pl.BlockSpec((H, F), const),               # w1 (out, in)
            pl.BlockSpec((H, 1), const),               # b1 (column)
            pl.BlockSpec((H, H), const),               # w2 (out, in)
            pl.BlockSpec((H, 1), const),               # b2 (column)
            pl.BlockSpec((H, 1), const),               # w3 (column)
            pl.BlockSpec((1, 1), const),               # b3
        ],
        out_specs=pl.BlockSpec((1, tb), lambda i: (0, i)),   # lane-dense row
        compiler_params=pltpu.CompilerParams(
            dimension_semantics=("parallel",)),
        cost_estimate=cost,
    )(x, w1t, b1, w2t, b2, w3, b3)

    # (1, B) -> (B, 1) to match the module's output shape.
    return out.reshape(B, 1)


def init_params(key, num_inputs, hidden_dim):
    """Deterministic parameter init, matching the PyTorch module.

    fc1/fc2: nn.Linear default (U(-1/sqrt(fan_in), +1/sqrt(fan_in)) for W, b).
    fc3:     initialize_weights(..., 'xavier', scale=1.0):
             xavier_uniform on the weight, zeros on the bias.
    Weights stored in nn.Linear (out, in) layout; biases / w3 as columns.
    """
    k1, k2, k3, k4, k5 = jax.random.split(key, 5)

    def linear_default(kw, kb, fan_in, fan_out):
        bound = 1.0 / (fan_in ** 0.5)
        wt = jax.random.uniform(kw, (fan_out, fan_in), jnp.float32,
                                minval=-bound, maxval=bound)
        b = jax.random.uniform(kb, (fan_out, 1), jnp.float32,
                               minval=-bound, maxval=bound)
        return wt, b

    w1t, b1 = linear_default(k1, k2, num_inputs, hidden_dim)
    w2t, b2 = linear_default(k3, k4, hidden_dim, hidden_dim)

    # xavier_uniform for fc3 weight (fan_in=hidden_dim, fan_out=1), zero bias.
    limit = (6.0 / (hidden_dim + 1)) ** 0.5
    w3 = jax.random.uniform(k5, (hidden_dim, 1), jnp.float32,
                            minval=-limit, maxval=limit)
    b3 = jnp.zeros((1, 1), jnp.float32)

    return dict(w1t=w1t, b1=b1, w2t=w2t, b2=b2, w3=w3, b3=b3)


def _reference(x, p):
    h = jnp.tanh(x @ p["w1t"].T + p["b1"].T)
    h = jnp.tanh(h @ p["w2t"].T + p["b2"].T)
    return h @ p["w3"] + p["b3"]


if __name__ == "__main__":
    num_inputs = 32
    hidden_dim = 32
    batch = 8

    key = jax.random.PRNGKey(0)
    kx, kp = jax.random.split(key)
    x = jax.random.normal(kx, (batch, num_inputs), jnp.float32)
    params = init_params(kp, num_inputs, hidden_dim)

    ref = _reference(x, params)

    # Pure-f32 path (single grid step) -- exact eval-mode module semantics.
    out_f32 = jax.block_until_ready(
        classifier_forward(x, params, use_bf16=False))
    assert out_f32.shape == (batch, 1)
    assert jnp.allclose(out_f32, ref, atol=1e-5, rtol=1e-5)

    # Default path: bf16 MXU operands, f32 accumulation / bias / tanh.
    out_bf16 = jax.block_until_ready(classifier_forward(x, params))
    assert jnp.allclose(out_bf16, ref, atol=5e-2, rtol=5e-2)

    # Larger batch: 2-step pipelined grid (also splits across v7x's 2 TCs).
    xb = jax.random.normal(kx, (2048, num_inputs), jnp.float32)
    ref_big = _reference(xb, params)
    out_big = jax.block_until_ready(classifier_forward(xb, params))
    assert out_big.shape == (2048, 1)
    assert jnp.allclose(out_big, ref_big, atol=5e-2, rtol=5e-2)

    # Small explicit tile -> 8-step grid exercises the batch-tiling path (f32).
    out_tiled = jax.block_until_ready(
        classifier_forward(xb, params, block_b=256, use_bf16=False))
    assert jnp.allclose(out_tiled, ref_big, atol=1e-5, rtol=1e-5)

    print("KERNEL_OK")
</pallas_src>

<mosaic_0001>
module attributes {stable_mosaic.version = 11 : i64} {
  func.func @classifier_kernel(%arg0: i32, %arg1: memref<8x32xf32, #tpu.memory_space<vmem>>, %arg2: memref<32x32xf32, #tpu.memory_space<vmem>>, %arg3: memref<32x1xf32, #tpu.memory_space<vmem>>, %arg4: memref<32x32xf32, #tpu.memory_space<vmem>>, %arg5: memref<32x1xf32, #tpu.memory_space<vmem>>, %arg6: memref<32x1xf32, #tpu.memory_space<vmem>>, %arg7: memref<1x1xf32, #tpu.memory_space<vmem>>, %arg8: memref<1x8xf32, #tpu.memory_space<vmem>>) attributes {dimension_semantics = [#tpu.dimension_semantics<parallel>], iteration_bounds = array<i64: 1>, scalar_prefetch = 0 : i64, scratch_operands = 0 : i64, tpu.core_type = #tpu.core_type<tc>, window_params = [{transform_indices = @transform_0, window_bounds = array<i64: 8, 32>}, {pipeline_mode = #tpu.pipeline_mode<synchronous>, transform_indices = @transform_1, window_bounds = array<i64: 32, 32>}, {pipeline_mode = #tpu.pipeline_mode<synchronous>, transform_indices = @transform_2, window_bounds = array<i64: 32, 1>}, {pipeline_mode = #tpu.pipeline_mode<synchronous>, transform_indices = @transform_3, window_bounds = array<i64: 32, 32>}, {pipeline_mode = #tpu.pipeline_mode<synchronous>, transform_indices = @transform_4, window_bounds = array<i64: 32, 1>}, {pipeline_mode = #tpu.pipeline_mode<synchronous>, transform_indices = @transform_5, window_bounds = array<i64: 32, 1>}, {pipeline_mode = #tpu.pipeline_mode<synchronous>, transform_indices = @transform_6, window_bounds = array<i64: 1, 1>}, {transform_indices = @transform_7, window_bounds = array<i64: 1, 8>}]} {
    %c0 = arith.constant 0 : index
    %c0_0 = arith.constant 0 : index
    %0 = vector.load %arg1[%c0, %c0_0] : memref<8x32xf32, #tpu.memory_space<vmem>>, vector<8x32xf32>
    %c0_1 = arith.constant 0 : index
    %c0_2 = arith.constant 0 : index
    %1 = vector.load %arg2[%c0_1, %c0_2] : memref<32x32xf32, #tpu.memory_space<vmem>>, vector<32x32xf32>
    %cst = arith.constant dense<0.000000e+00> : vector<32x8xf32>
    %2 = tpu.matmul %1, %0, %cst {dimension_numbers = #tpu.dot_dimension_numbers<[1], [1], [0], [0], [0, 0, 1, 0], [], []>} : vector<32x32xf32>, vector<8x32xf32>, vector<32x8xf32> -> vector<32x8xf32>
    %c0_3 = arith.constant 0 : index
    %c0_4 = arith.constant 0 : index
    %3 = vector.load %arg3[%c0_3, %c0_4] : memref<32x1xf32, #tpu.memory_space<vmem>>, vector<32x1xf32>
    %4 = vector.broadcast %3 : vector<32x1xf32> to vector<32x8xf32>
    %5 = arith.addf %2, %4 : vector<32x8xf32>
    %6 = math.tanh %5 : vector<32x8xf32>
    %c0_5 = arith.constant 0 : index
    %c0_6 = arith.constant 0 : index
    %7 = vector.load %arg4[%c0_5, %c0_6] : memref<32x32xf32, #tpu.memory_space<vmem>>, vector<32x32xf32>
    %cst_7 = arith.constant dense<0.000000e+00> : vector<32x8xf32>
    %8 = tpu.matmul %7, %6, %cst_7 {dimension_numbers = #tpu.dot_dimension_numbers<[1], [0], [0], [1], [0, 0, 1, 1], [], []>} : vector<32x32xf32>, vector<32x8xf32>, vector<32x8xf32> -> vector<32x8xf32>
    %c0_8 = arith.constant 0 : index
    %c0_9 = arith.constant 0 : index
    %9 = vector.load %arg5[%c0_8, %c0_9] : memref<32x1xf32, #tpu.memory_space<vmem>>, vector<32x1xf32>
    %10 = vector.broadcast %9 : vector<32x1xf32> to vector<32x8xf32>
    %11 = arith.addf %8, %10 : vector<32x8xf32>
    %12 = math.tanh %11 : vector<32x8xf32>
    %c0_10 = arith.constant 0 : index
    %c0_11 = arith.constant 0 : index
    %13 = vector.load %arg6[%c0_10, %c0_11] : memref<32x1xf32, #tpu.memory_space<vmem>>, vector<32x1xf32>
    %14 = vector.broadcast %13 : vector<32x1xf32> to vector<32x8xf32>
    %15 = arith.mulf %12, %14 : vector<32x8xf32>
    %cst_12 = arith.constant dense<0.000000e+00> : vector<8xf32>
    %16 = vector.multi_reduction <add>, %15, %cst_12 [0] : vector<32x8xf32> to vector<8xf32>
    %17 = vector.shape_cast %16 : vector<8xf32> to vector<1x8xf32>
    %c0_13 = arith.constant 0 : index
    %c0_14 = arith.constant 0 : index
    %18 = vector.load %arg7[%c0_13, %c0_14] : memref<1x1xf32, #tpu.memory_space<vmem>>, vector<1x1xf32>
    %19 = vector.broadcast %18 : vector<1x1xf32> to vector<1x8xf32>
    %20 = arith.addf %17, %19 : vector<1x8xf32>
    %c0_15 = arith.constant 0 : index
    %c0_16 = arith.constant 0 : index
    %21 = vector.load %arg8[%c0_15, %c0_16] : memref<1x8xf32, #tpu.memory_space<vmem>>, vector<1x8xf32>
    tpu.vector_store %arg8[%c0_15, %c0_16], %20 {strides = array<i32>} : memref<1x8xf32, #tpu.memory_space<vmem>>, vector<1x8xf32>,
    return
  }
  func.func @transform_0(%arg0: i32) -> (i32, i32) {
    %c0_i32 = arith.constant 0 : i32
    %c0_i32_0 = arith.constant 0 : i32
    return %arg0, %c0_i32 : i32, i32
  }
  func.func @transform_1(%arg0: i32) -> (i32, i32) {
    %c0_i32 = arith.constant 0 : i32
    %c0_i32_0 = arith.constant 0 : i32
    %c0_i32_1 = arith.constant 0 : i32
    return %c0_i32, %c0_i32_0 : i32, i32
  }
  func.func @transform_2(%arg0: i32) -> (i32, i32) {
    %c0_i32 = arith.constant 0 : i32
    %c0_i32_0 = arith.constant 0 : i32
    %c0_i32_1 = arith.constant 0 : i32
    return %c0_i32, %c0_i32_0 : i32, i32
  }
  func.func @transform_3(%arg0: i32) -> (i32, i32) {
    %c0_i32 = arith.constant 0 : i32
    %c0_i32_0 = arith.constant 0 : i32
    %c0_i32_1 = arith.constant 0 : i32
    return %c0_i32, %c0_i32_0 : i32, i32
  }
  func.func @transform_4(%arg0: i32) -> (i32, i32) {
    %c0_i32 = arith.constant 0 : i32
    %c0_i32_0 = arith.constant 0 : i32
    %c0_i32_1 = arith.constant 0 : i32
    return %c0_i32, %c0_i32_0 : i32, i32
  }
  func.func @transform_5(%arg0: i32) -> (i32, i32) {
    %c0_i32 = arith.constant 0 : i32
    %c0_i32_0 = arith.constant 0 : i32
    %c0_i32_1 = arith.constant 0 : i32
    return %c0_i32, %c0_i32_0 : i32, i32
  }
  func.func @transform_6(%arg0: i32) -> (i32, i32) {
    %c0_i32 = arith.constant 0 : i32
    %c0_i32_0 = arith.constant 0 : i32
    %c0_i32_1 = arith.constant 0 : i32
    return %c0_i32, %c0_i32_0 : i32, i32
  }
  func.func @transform_7(%arg0: i32) -> (i32, i32) {
    %c0_i32 = arith.constant 0 : i32
    %c0_i32_0 = arith.constant 0 : i32
    return %c0_i32, %arg0 : i32, i32
  }
}

</mosaic_0001>

<bundles_post_ra>
// kernel: tpu_custom_call.1
= control target key start
LH: loop header
LB: loop body
LE: loop exit
PB: predicated region body
PF: predicated region fallthrough
CT: control target
= control target key end

     0   :  { %s568_s0 = inlined_call_operand.vmem [shape: f32[8,32], index: 0, kind: input, shape index: {}]   ;;  %s569_s1 = inlined_call_operand.vmem [shape: f32[32,32], index: 1, kind: input, shape index: {}]   ;;  %s570_s2 = inlined_call_operand.vmem [shape: f32[32,1], index: 2, kind: input, shape index: {}]   ;;  %s571_s3 = inlined_call_operand.vmem [shape: f32[32,32], index: 3, kind: input, shape index: {}]   ;;  %s572_s4 = inlined_call_operand.vmem [shape: f32[32,1], index: 4, kind: input, shape index: {}]   ;;  %s573_s5 = inlined_call_operand.vmem [shape: f32[32,1], index: 5, kind: input, shape index: {}]   ;;  %s574_s6 = inlined_call_operand.<no memory space> [shape: f32[1,1], index: 6, kind: input, shape index: {}]   ;;  %s575_s7 = inlined_call_operand.hbm [shape: f32[1,8], index: 7, kind: output, shape index: {}]  }
   0x1   :  { %v12_v0 = vstv %s574_s6 }
   0x2   :  { %13 = vst [vmem:[#allocation2] sm:$0x1] %v12_v0 }
   0x3   :  { %v29_v1 = vld [vmem:[%s568_s0] sm:$0xff]  ;;  %vm58_vm0 = vcmask 261120   ;;  %v37_v3 = vld [vmem:[%s570_s2 + $0x18] sm:$0xff]  ;;  %v31_v4 = vld [vmem:[%s569_s1 + $0x8] sm:$0xff]  ;;  %v447_v5 = vmov 0  }
   0x4   :  { %v30_v2 = vld [vmem:[%s569_s1] sm:$0xff]  ;;  %383 = vmatprep.subr.msk.mxu0 %vm58_vm0, %v29_v1  ;;  %407 = vset.pattern.permute.xlu0 %v447_v5  ;;  %v35_v6 = vld [vmem:[%s570_s2 + $0x8] sm:$0xff]  ;;  %v32_v7 = vld [vmem:[%s569_s1 + $0x10] sm:$0xff] }
   0x5   :  { %385 = vmatprep.mubr.msk.f32.mxu0 %vm58_vm0, %v30_v2  ;;  %384 = vmatpush3.xpose.msk.msra.mxu0 %vm58_vm0, %v29_v1  ;;  %v36_v8 = vld [vmem:[%s570_s2 + $0x10] sm:$0xff]  ;;  %v34_v9 = vld [vmem:[%s570_s2] sm:$0xff]  ;;  %v33_v10 = vld [vmem:[%s569_s1 + $0x18] sm:$0xff] }
   0x6   :  { %55 = vperm.xlu0 %407, %v37_v3   ;;  %408 = vset.pattern.permute.xlu1 %v447_v5 }
   0x7   :  { %45 = vperm.xlu1 %408, %v35_v6  }
   0x8   :  { %386 = vmatmul.mubr.msk.f32.vlgmr.msra.gmra.mxu0 %vm58_vm0, %v31_v4 }
   0x9   :  { %388 = vmatprep.mubr.msk.f32.mxu0 %vm58_vm0, %v32_v7 }
   0xa   :  { %14 = vsyncpa [#allocation4], 0  ;;  %50 = vperm.xlu0 %407, %v36_v8   ;;  %v167_v11 = vld [vmem:[%s572_s4] sm:$0xff]  ;;  %v168_v12 = vld [vmem:[%s572_s4 + $0x8] sm:$0xff]  ;;  %vm320_vm1 = vcmask 64512   ;;  %v340_v6 = vlaneseq  ;;  %vm345_vm2 = vcmask 57344  }
   0xb   :  { %40 = vperm.xlu1 %408, %v34_v9   ;;  %v169_v13 = vld [vmem:[%s572_s4 + $0x10] sm:$0xff]  ;;  %v170_v14 = vld [vmem:[%s572_s4 + $0x18] sm:$0xff]  ;;  %v292_v15 = vld [vmem:[%s573_s5] sm:$0xff] }
   0xc   :  { %389 = vmatmul.mubr.msk.f32.gmra.mxu0 %vm58_vm0, %v33_v10  ;;  %v293_v16 = vld [vmem:[%s573_s5 + $0x8] sm:$0xff]  ;;  %v294_v17 = vld [vmem:[%s573_s5 + $0x10] sm:$0xff]  ;;  %v295_v18 = vld [vmem:[%s573_s5 + $0x18] sm:$0xff]  ;;  %v341_v9 = vshrl.u32 %v340_v6, 7 }
   0xd   :  { %v334_v19 = vld [vmem:[#allocation2] sm:$0x1]  ;;  %v164_v37 = vld [vmem:[%s571_s3 + $0x8] sm:$0xff]  ;;  %v165_v38 = vld [vmem:[%s571_s3 + $0x10] sm:$0xff] }
   0xe   :  { %173 = vperm.xlu0 %407, %v167_v11   ;;  %v163_v20 = vld [vmem:[%s571_s3] sm:$0xff]  ;;  %v166_v39 = vld [vmem:[%s571_s3 + $0x18] sm:$0xff]  ;;  %s448_s3 = smov [#allocation3]  }
   0xf   :  { %178 = vperm.xlu1 %408, %v168_v12   ;;  %399 = vmatprep.mubr.msk.f32.mxu1 %vm58_vm0, %v163_v20  ;;  %v342_v12 = vsub.s32 0, %v341_v9  ;;  %s353_s14 = sshll.u32 %s448_s3, 4  ;;  %s354_s14 = int_to_ptr.vmem [resolvable:$true] %s353_s14 }
  0x10   :  { %s425_s15 = scalar_lea.vmem %s354_s14, 16  ;;  %s429_s16 = scalar_lea.vmem %s354_s14, 32 }
  0x11   :  { %p426_p0 = scmp.ne.s32.totalorder %s354_s14, %s425_s15  ;;  %p430_p1 = scmp.lt.s32.totalorder %s354_s14, %s354_s14 }
  0x12   :  { %183 = vperm.xlu0 %407, %v169_v13   ;;  %p431_p2 = scmp.lt.s32.totalorder %s429_s16, %s425_s15 }
  0x13   :  { %188 = vperm.xlu1 %408, %v170_v14  }
  0x14   :  { %p432_p3 = por %p431_p2, %p430_p1 }
  0x16   :  { %298 = vperm.xlu0 %407, %v292_v15   ;;  %p433_p4 = pnand %p432_p3, %p426_p0 }
  0x17   :  { %303 = vperm.xlu1 %408, %v293_v16  }
  0x1a   :  { %308 = vperm.xlu0 %407, %v294_v17  }
  0x1b   :  { %313 = vperm.xlu1 %408, %v295_v18  }
  0x1e   :  { %337 = vperm.xlu0 %407, %v334_v19  }
  0x81   :  { %v56_v21 = vpop.permute.xlu0 %55 }
  0x82   :  { %v46_v23 = vpop.permute.xlu1 %45 }
  0x85   :  { %v51_v27 = vpop.permute.xlu0 %50 }
  0x86   :  { %v41_v31 = vpop.permute.xlu1 %40 }
  0x89   :  { %v174_v41 = vpop.permute.xlu0 %173 }
  0x8a   :  { %v179_v40 = vpop.permute.xlu1 %178 }
  0x8d   :  { %v184_v49 = vpop.permute.xlu0 %183 }
  0x8e   :  { %v189_v46 = vpop.permute.xlu1 %188 }
  0x91   :  { %v299_v53 = vpop.permute.xlu0 %298 }
  0x92   :  { %v304_v54 = vpop.permute.xlu1 %303 }
  0x95   :  { %v309_v61 = vpop.permute.xlu0 %308 }
  0x96   :  { %v314_v62 = vpop.permute.xlu1 %313 }
  0x99   :  { %v338_v14 = vpop.permute.xlu0 %337 }
  0x9a   :  { %v343_v16 = vrot.slane %v338_v14, %v342_v12 }
  0xc8   :  { %v387_v22 = vpop.f32.mrf.mxu0 }
  0xc9   :  { %v146_v29 = vadd.f32 %v387_v22, %v46_v23 }
  0xca   :  { %v140_v24 = vpop.f32.mrf.mxu0 }
  0xcb   :  { %v141_v32 = vadd.f32 %v140_v24, %v41_v31 }
  0xcc   :  { %v390_v25 = vpop.f32.mrf.mxu0 }
  0xcd   :  { %v156_v26 = vadd.f32 %v390_v25, %v56_v21 }
  0xce   :  { %v150_v28 = vpop.f32.mrf.mxu0 }
  0xcf   :  { %409 = vtanh.f32 %v156_v26  ;;  %v151_v30 = vadd.f32 %v150_v28, %v51_v27 }
  0xd1   :  { %411 = vtanh.f32 %v151_v30 }
  0xd2   :  { %413 = vtanh.f32 %v146_v29 }
  0xd3   :  { %415 = vtanh.f32 %v141_v32 }
  0xdc   :  { %v410_v33 = vpop.eup %409 }
  0xdd   :  { %391 = vmatprep.subr.mxu1 %v410_v33 }
  0xde   :  { %v412_v34 = vpop.eup %411  ;;  %392 = vmatpush3.msra.mxu1 %v410_v33 }
  0xdf   :  { %393 = vmatprep.subr.mxu1 %v412_v34  ;;  %v414_v35 = vpop.eup %413 }
  0xe0   :  { %394 = vmatpush3.msra.mxu1 %v412_v34  ;;  %v416_v36 = vpop.eup %415 }
  0xe1   :  { %395 = vmatprep.subr.mxu1 %v414_v35 }
  0xe2   :  { %396 = vmatpush3.msra.mxu1 %v414_v35 }
  0xe3   :  { %397 = vmatprep.subr.mxu1 %v416_v36 }
  0xe4   :  { %398 = vmatpush3.msra.mxu1 %v416_v36 }
  0xe5   :  { %400 = vmatmul.mubr.msk.f32.vlgmr.msra.gmra.mxu1 %vm58_vm0, %v164_v37 }
  0xe6   :  { %402 = vmatprep.mubr.msk.f32.mxu1 %vm58_vm0, %v165_v38 }
  0xe9   :  { %403 = vmatmul.mubr.msk.f32.gmra.mxu1 %vm58_vm0, %v166_v39 }
 0x1a5   :  { %v401_v42 = vpop.f32.mrf.mxu1 }
 0x1a6   :  { %v275_v43 = vadd.f32 %v401_v42, %v179_v40 }
 0x1a7   :  { %v269_v44 = vpop.f32.mrf.mxu1 }
 0x1a8   :  { %417 = vtanh.f32 %v275_v43  ;;  %v270_v45 = vadd.f32 %v269_v44, %v174_v41 }
 0x1a9   :  { %v404_v47 = vpop.f32.mrf.mxu1 }
 0x1aa   :  { %419 = vtanh.f32 %v270_v45  ;;  %v285_v48 = vadd.f32 %v404_v47, %v189_v46 }
 0x1ab   :  { %v279_v50 = vpop.f32.mrf.mxu1 }
 0x1ac   :  { %421 = vtanh.f32 %v285_v48  ;;  %v280_v51 = vadd.f32 %v279_v50, %v184_v49 }
 0x1ae   :  { %423 = vtanh.f32 %v280_v51 }
 0x1b5   :  { %v418_v52 = vpop.eup %417 }
 0x1b6   :  { %v317_v56 = vmul.f32 %v418_v52, %v304_v54 }
 0x1b7   :  { %v420_v55 = vpop.eup %419 }
 0x1b8   :  { %v316_v57 = vmul.f32 %v420_v55, %v299_v53  ;;  %v322_v1 = vsel %vm320_vm1, %v317_v56, 0.0 }
 0x1b9   :  { %v422_v58 = vpop.eup %421 }
 0x1ba   :  { %v321_v59 = vsel %vm320_vm1, %v316_v57, 0.0  ;;  %v319_v0 = vmul.f32 %v422_v58, %v314_v62 }
 0x1bb   :  { %v424_v60 = vpop.eup %423  ;;  %v323_v2 = vadd.f32 %v322_v1, %v321_v59 }
 0x1bc   :  { %v318_v63 = vmul.f32 %v424_v60, %v309_v61  ;;  %v326_v5 = vsel %vm320_vm1, %v319_v0, 0.0 }
 0x1be   :  { %v324_v3 = vsel %vm320_vm1, %v318_v63, 0.0 }
 0x1bf   :  { %v325_v4 = vadd.f32 %v324_v3, %v323_v2 }
 0x1c1   :  { %v327_v7 = vadd.f32 %v326_v5, %v325_v4 }
 0x1c3   :  { %v328_v8 = vrot.slane %v327_v7, 4 }
 0x1c5   :  { %v329_v10 = vadd.f32 %v328_v8, %v327_v7 }
 0x1c7   :  { %v330_v11 = vrot.slane %v329_v10, 2 }
 0x1c9   :  { %v331_v13 = vadd.f32 %v330_v11, %v329_v10 }
 0x1cb   :  { %v332_v15 = vrot.slane %v331_v13, 1 }
 0x1cd   :  { %v333_v17 = vadd.f32 %v332_v15, %v331_v13 }
 0x1cf   :  { %v344_v18 = vadd.f32 %v343_v16, %v333_v17 }
 0x1d1   :  { %346 = vst.msk [vmem:[#allocation3] sm:$0x1] %vm345_vm2, %v344_v18 }
 0x1d2   :  { %436 = shalt.err (!%p433_p4)
}
 0x1d3   :  { %356 = dma.vmem_to_hbm [thread:$0]  %s354_s14, 16, %s575_s7, [#allocation4]  }
 0x1d4   :  { %445 = dma.done.wait [#allocation4], 16  }
 0x1d5   :  { %446 = vsyncadd [#allocation4], 4294967280 }
 0x1d6   :  { %360 = vsyncpa [#allocation4], 1 }

</bundles_post_ra>
